<compile_context>
chip_gen: v7x
topology: tpu7x:2x2x1
jax: 0.10.0
libtpu: 0.0.40
codegen_flags: <defaults>
</compile_context>

<pallas_src>
import functools

import jax
import jax.numpy as jnp
from jax import lax
from jax.experimental import pallas as pl
from jax.experimental.pallas import tpu as pltpu


def _round_up(v, m):
    return ((v + m - 1) // m) * m


def _i32(v):
    """Python int -> int32 constant (two's-complement wrap)."""
    v &= 0xFFFFFFFF
    if v >= 0x80000000:
        v -= 0x100000000
    return jnp.int32(v)


def _mix32(x):
    """'lowbias32' integer finalizer; int32 wrapping arithmetic == uint32."""
    x = x ^ lax.shift_right_logical(x, jnp.int32(16))
    x = x * _i32(0x7FEB352D)
    x = x ^ lax.shift_right_logical(x, jnp.int32(15))
    x = x * _i32(0x846CA68B)
    x = x ^ lax.shift_right_logical(x, jnp.int32(16))
    return x


def _dropout_uniform(seed, row0, col0, shape):
    """Uniform [0,1) draws keyed by (seed, global row, global col).

    Counter-based hash -> realized mask is independent of the tile
    decomposition and identical for every output-column tile j.
    """
    row = lax.broadcasted_iota(jnp.int32, shape, 0) + row0
    col = lax.broadcasted_iota(jnp.int32, shape, 1) + col0
    x = row * _i32(0x9E3779B1) + col * _i32(0x85EBCA6B) + seed
    bits = _mix32(_mix32(x) ^ row)
    # Top 24 bits -> exact float32 in [0, 1).
    return (lax.shift_right_logical(bits, jnp.int32(8)).astype(jnp.float32)
            * (1.0 / (1 << 24)))


def _onelayer_kernel(seed_ref, x_ref, w_ref, b_ref, o_ref, *acc,
                     p, train, compute_dtype, nk):
    # acc: optional f32 VMEM scratch, only needed when the output dtype is not
    # f32 AND the reduction is split over k.  For f32 outputs we accumulate
    # directly into the resident output block (its index_map ignores k).
    acc_ref = acc[0] if acc else o_ref
    k = pl.program_id(2)

    # ReLU (+ inverted dropout) in f32 on the VPU.
    h = jnp.maximum(x_ref[...].astype(jnp.float32), 0.0)

    if train and p > 0.0:
        if p >= 1.0:                      # degenerate case: drop everything
            h = jnp.zeros_like(h)
        else:
            tm, tk = h.shape
            u = _dropout_uniform(seed_ref[0], pl.program_id(0) * tm, k * tk,
                                 h.shape)
            h = jnp.where(u >= p, h * (1.0 / (1.0 - p)), 0.0)
            # TODO(synk): matches torch.nn.Dropout distributionally (i.i.d.
            # Bernoulli keep + 1/(1-p) scaling); cannot bit-match torch's RNG.

    # Linear: (tm, tk) @ (tk, tn) on the MXU, f32 accumulation.  W was padded,
    # transposed to (K, N) and cast to compute_dtype once at setup time.
    partial = jnp.dot(h.astype(compute_dtype), w_ref[...],
                      preferred_element_type=jnp.float32)

    if nk == 1:
        # Single reduction step: no accumulator / zero-init needed at all.
        o_ref[...] = (partial + b_ref[...]).astype(o_ref.dtype)
    else:
        @pl.when(k == 0)
        def _():
            acc_ref[...] = jnp.zeros_like(acc_ref)

        acc_ref[...] += partial

        @pl.when(k == nk - 1)
        def _():
            o_ref[...] = (acc_ref[...] + b_ref[...]).astype(o_ref.dtype)


class OneLayerNetPallas:
    """ReLU -> Dropout -> Linear with one-time weight prep (pad/transpose/cast)."""

    def __init__(self, weight, bias, dropout=0.5, *,
                 compute_dtype=jnp.bfloat16, tile_n=None, tile_k=None,
                 vmem_budget_bytes=8 << 20):
        weight = jnp.asarray(weight)
        out_size, in_size = weight.shape
        assert bias.shape == (out_size,)
        self.in_size, self.out_size = in_size, out_size
        self.p = float(dropout)
        self.compute_dtype = jnp.dtype(compute_dtype)

        # ---- padding-aware tile selection (minimize wasted MXU/HBM work) ----
        tn = tile_n or (_round_up(out_size, 128) if out_size <= 1024 else
                        min((1024, 512, 256, 128),
                            key=lambda c: (_round_up(out_size, c), -c)))
        tk = tile_k or (_round_up(in_size, 128) if in_size <= 2048 else
                        min((2048, 1024, 512),
                            key=lambda c: (_round_up(in_size, c), -c)))

        # Keep double-buffered tiles (worst case tm=512, f32 x / f32 out) under
        # the default scoped-VMEM budget of every TPU generation.
        w_item = self.compute_dtype.itemsize

        def footprint(tn_, tk_, tm_=512):
            return (2 * (tm_ * tk_ * 4 + tk_ * tn_ * w_item
                         + tm_ * tn_ * 4 + tn_ * 4) + tm_ * tn_ * 4)

        while footprint(tn, tk) > vmem_budget_bytes:
            if tk > 512:
                tk = max(128, _round_up(tk // 2, 128))
            elif tn > 256:
                tn = max(128, _round_up(tn // 2, 128))
            else:
                break
        self.tn, self.tk = tn, tk
        self.Np = _round_up(out_size, tn)
        self.Kp = _round_up(in_size, tk)
        self.nj = self.Np // tn
        self.nk = self.Kp // tk

        # ---- one-time weight/bias prep (hoisted out of the forward call) ----
        # Pad (out,in)->(Np,Kp), transpose to (Kp,Np) so the kernel contracts
        # with a plain jnp.dot (no per-step transpose), cast to the MXU dtype.
        w_p = jnp.pad(weight, ((0, self.Np - out_size), (0, self.Kp - in_size)))
        self.w_t = jnp.asarray(w_p.T, dtype=self.compute_dtype)
        self.b_p = jnp.pad(jnp.asarray(bias, jnp.float32),
                           (0, self.Np - out_size)).reshape(1, self.Np)

    def __call__(self, x, *, train=False, seed=0):
        B, in_size = x.shape
        assert in_size == self.in_size
        # Batch tile: exact multiple of 8 for small batches (no wasted rows),
        # padding-minimizing choice from {512,256,128} for large batches.
        if B <= 256:
            tm = _round_up(B, 8)
        else:
            tm = min((512, 256, 128), key=lambda c: (_round_up(B, c), -c))
        Mp = _round_up(B, tm)
        nm = Mp // tm
        # TODO(synk): on v7x (2 TensorCores) a grid with nm == nj == 1 uses only
        # one core; halving tm/tn trades extra W reads for core parallelism.

        needs_pad = (Mp != B) or (self.Kp != in_size)
        x_p = (jnp.pad(x, ((0, Mp - B), (0, self.Kp - in_size)))
               if needs_pad else x)

        out_dtype = x.dtype
        nk, nj, tn, tk = self.nk, self.nj, self.tn, self.tk
        use_scratch = (nk > 1) and (out_dtype != jnp.float32)
        scratch = [pltpu.VMEM((tm, tn), jnp.float32)] if use_scratch else []

        kernel = functools.partial(_onelayer_kernel, p=self.p,
                                   train=bool(train),
                                   compute_dtype=self.compute_dtype, nk=nk)

        cost = pl.CostEstimate(
            flops=2 * Mp * self.Np * self.Kp,
            transcendentals=0,
            # Actual traffic: x re-read once per output-column tile, W re-read
            # once per batch tile, output written once.
            bytes_accessed=(x_p.size * x_p.dtype.itemsize * nj
                            + self.w_t.size * self.w_t.dtype.itemsize * nm
                            + self.b_p.size * 4 * nm
                            + Mp * self.Np * jnp.dtype(out_dtype).itemsize))

        seed_arr = jnp.asarray([seed], dtype=jnp.int32)

        out = pl.pallas_call(
            kernel,
            out_shape=jax.ShapeDtypeStruct((Mp, self.Np), out_dtype),
            grid_spec=pltpu.PrefetchScalarGridSpec(
                num_scalar_prefetch=1,                       # dropout seed -> SMEM
                grid=(nm, nj, nk),                           # reduction axis last
                in_specs=[
                    pl.BlockSpec((tm, tk), lambda i, j, k, s: (i, k)),   # x
                    pl.BlockSpec((tk, tn), lambda i, j, k, s: (k, j)),   # W^T (K,N)
                    pl.BlockSpec((1, tn), lambda i, j, k, s: (0, j)),    # bias row
                ],
                out_specs=pl.BlockSpec((tm, tn), lambda i, j, k, s: (i, j)),
                scratch_shapes=scratch,
            ),
            compiler_params=pltpu.CompilerParams(
                dimension_semantics=("parallel", "parallel", "arbitrary")),
            cost_estimate=cost,
        )(seed_arr, x_p, self.w_t, self.b_p)

        return out[:B, :self.out_size]


def one_layer_net(x, weight, bias, *, dropout=0.5, train=False, seed=0, **kw):
    """One-off functional form; for repeated calls build OneLayerNetPallas once."""
    return OneLayerNetPallas(weight, bias, dropout, **kw)(x, train=train, seed=seed)


if __name__ == "__main__":
    key = jax.random.PRNGKey(0)
    kx, kw, kb, kx2, kw2, kb2 = jax.random.split(key, 6)

    # --- Test 1: small shapes implied by the module (eval mode) -------------
    B, in_size, out_size = 8, 32, 16
    x = jax.random.normal(kx, (B, in_size), dtype=jnp.float32)
    bound = 1.0 / (in_size ** 0.5)
    weight = jax.random.uniform(kw, (out_size, in_size), minval=-bound,
                                maxval=bound, dtype=jnp.float32)
    bias = jax.random.uniform(kb, (out_size,), minval=-bound, maxval=bound,
                              dtype=jnp.float32)
    y_ref = jnp.maximum(x, 0.0) @ weight.T + bias

    net_f32 = OneLayerNetPallas(weight, bias, dropout=0.5,
                                compute_dtype=jnp.float32)
    y = jax.block_until_ready(net_f32(x, train=False))
    assert y.shape == (B, out_size)
    assert jnp.allclose(y, y_ref, atol=1e-5, rtol=1e-5), "f32 eval mismatch"

    net_bf16 = OneLayerNetPallas(weight, bias, dropout=0.5)   # default bf16 MXU
    y_b = jax.block_until_ready(net_bf16(x, train=False))
    assert jnp.allclose(y_b, y_ref, atol=2e-2, rtol=2e-2), "bf16 eval mismatch"

    # --- Test 2: multi-tile K reduction + tiled N (forced small tiles) ------
    B2, in2, out2 = 64, 512, 384
    x2 = jax.random.normal(kx2, (B2, in2), dtype=jnp.float32)
    bound2 = 1.0 / (in2 ** 0.5)
    w2 = jax.random.uniform(kw2, (out2, in2), minval=-bound2, maxval=bound2,
                            dtype=jnp.float32)
    b2 = jax.random.uniform(kb2, (out2,), minval=-bound2, maxval=bound2,
                            dtype=jnp.float32)
    net2 = OneLayerNetPallas(w2, b2, dropout=0.5, tile_n=128, tile_k=128)
    y2 = jax.block_until_ready(net2(x2, train=False))
    y2_ref = jnp.maximum(x2, 0.0) @ w2.T + b2
    assert jnp.allclose(y2, y2_ref, atol=2e-2, rtol=2e-2), "multi-tile mismatch"

    # --- Test 3: train-mode dropout semantics (statistical) -----------------
    # With x = ones, W = I, b = 0 the output equals the dropped activation:
    # every element must be exactly 0 or 1/(1-p), with ~ (1-p) kept.
    D = 256
    x3 = jnp.ones((D, D), dtype=jnp.float32)
    w3 = jnp.eye(D, dtype=jnp.float32)
    b3 = jnp.zeros((D,), dtype=jnp.float32)
    p = 0.5
    net3 = OneLayerNetPallas(w3, b3, dropout=p)
    y3 = jax.block_until_ready(net3(x3, train=True, seed=123))
    scale = 1.0 / (1.0 - p)
    is_zero = jnp.abs(y3) < 1e-5
    is_kept = jnp.abs(y3 - scale) < 1e-5
    assert bool(jnp.all(is_zero | is_kept)), "dropout values not in {0, 1/(1-p)}"
    keep_rate = float(jnp.mean(is_kept.astype(jnp.float32)))
    assert abs(keep_rate - (1.0 - p)) < 0.03, keep_rate
    # Determinism for a fixed seed, and tile-size invariance of the mask.
    y3b = jax.block_until_ready(net3(x3, train=True, seed=123))
    assert bool(jnp.all(y3 == y3b)), "dropout not deterministic for fixed seed"
    net3_small = OneLayerNetPallas(w3, b3, dropout=p, tile_n=128, tile_k=128)
    y3c = jax.block_until_ready(net3_small(x3, train=True, seed=123))
    assert bool(jnp.all(y3 == y3c)), "dropout mask depends on tile size"
    # Eval mode is the identity dropout (matches nn.Dropout.eval()).
    y3_eval = jax.block_until_ready(net3(x3, train=False))
    assert jnp.allclose(y3_eval, jnp.ones_like(y3_eval), atol=1e-5)

    print("KERNEL_OK")
</pallas_src>

<mosaic_0001>
module attributes {stable_mosaic.version = 11 : i64} {
  func.func @_onelayer_kernel(%arg0: i32, %arg1: i32, %arg2: i32, %arg3: memref<1xi32, #tpu.memory_space<smem>>, %arg4: memref<8x128xf32, #tpu.memory_space<vmem>>, %arg5: memref<128x128xf32, #tpu.memory_space<vmem>>, %arg6: memref<1x128xf32, #tpu.memory_space<vmem>>, %arg7: memref<8x128xf32, #tpu.memory_space<vmem>>) attributes {dimension_semantics = [#tpu.dimension_semantics<parallel>, #tpu.dimension_semantics<parallel>, #tpu.dimension_semantics<arbitrary>], iteration_bounds = array<i64: 1, 1, 1>, scalar_prefetch = 1 : i64, scratch_operands = 0 : i64, tpu.core_type = #tpu.core_type<tc>, window_params = [{transform_indices = @transform_0, window_bounds = array<i64: 8, 128>}, {transform_indices = @transform_1, window_bounds = array<i64: 128, 128>}, {transform_indices = @transform_2, window_bounds = array<i64: 1, 128>}, {transform_indices = @transform_3, window_bounds = array<i64: 8, 128>}]} {
    %c0 = arith.constant 0 : index
    %c0_0 = arith.constant 0 : index
    %0 = vector.load %arg4[%c0, %c0_0] : memref<8x128xf32, #tpu.memory_space<vmem>>, vector<8x128xf32>
    %cst = arith.constant 0.000000e+00 : f32
    %1 = vector.broadcast %cst : f32 to vector<8x128xf32>
    %2 = arith.maximumf %0, %1 : vector<8x128xf32>
    %c0_1 = arith.constant 0 : index
    %c0_2 = arith.constant 0 : index
    %3 = vector.load %arg5[%c0_1, %c0_2] : memref<128x128xf32, #tpu.memory_space<vmem>>, vector<128x128xf32>
    %cst_3 = arith.constant dense<0.000000e+00> : vector<8x128xf32>
    %4 = tpu.matmul %2, %3, %cst_3 {dimension_numbers = #tpu.dot_dimension_numbers<[1], [0], [0], [1], [0, 0, 1, 1], [], []>} : vector<8x128xf32>, vector<128x128xf32>, vector<8x128xf32> -> vector<8x128xf32>
    %c0_4 = arith.constant 0 : index
    %c0_5 = arith.constant 0 : index
    %5 = vector.load %arg6[%c0_4, %c0_5] : memref<1x128xf32, #tpu.memory_space<vmem>>, vector<1x128xf32>
    %6 = vector.broadcast %5 : vector<1x128xf32> to vector<8x128xf32>
    %7 = arith.addf %4, %6 : vector<8x128xf32>
    %c0_6 = arith.constant 0 : index
    %c0_7 = arith.constant 0 : index
    %8 = vector.load %arg7[%c0_6, %c0_7] : memref<8x128xf32, #tpu.memory_space<vmem>>, vector<8x128xf32>
    tpu.vector_store %arg7[%c0_6, %c0_7], %7 {strides = array<i32>} : memref<8x128xf32, #tpu.memory_space<vmem>>, vector<8x128xf32>,
    return
  }
  func.func @transform_0(%arg0: i32, %arg1: i32, %arg2: i32, %arg3: memref<1xi32, #tpu.memory_space<smem>>) -> (i32, i32) {
    %c0_i32 = arith.constant 0 : i32
    return %arg0, %arg2 : i32, i32
  }
  func.func @transform_1(%arg0: i32, %arg1: i32, %arg2: i32, %arg3: memref<1xi32, #tpu.memory_space<smem>>) -> (i32, i32) {
    %c0_i32 = arith.constant 0 : i32
    return %arg2, %arg1 : i32, i32
  }
  func.func @transform_2(%arg0: i32, %arg1: i32, %arg2: i32, %arg3: memref<1xi32, #tpu.memory_space<smem>>) -> (i32, i32) {
    %c0_i32 = arith.constant 0 : i32
    %c0_i32_0 = arith.constant 0 : i32
    return %c0_i32, %arg1 : i32, i32
  }
  func.func @transform_3(%arg0: i32, %arg1: i32, %arg2: i32, %arg3: memref<1xi32, #tpu.memory_space<smem>>) -> (i32, i32) {
    %c0_i32 = arith.constant 0 : i32
    return %arg0, %arg1 : i32, i32
  }
}

</mosaic_0001>

<bundles_post_ra>
// kernel: tpu_custom_call.1
= control target key start
LH: loop header
LB: loop body
LE: loop exit
PB: predicated region body
PF: predicated region fallthrough
CT: control target
= control target key end

     0   :  { %10 = vsyncpa [#allocation5], 0  ;;  %s391_s0 = inlined_call_operand.<no memory space> [shape: s32[1], index: 0, kind: input, shape index: {}]   ;;  %s392_s1 = inlined_call_operand.hbm [shape: f32[8,128], index: 1, kind: input, shape index: {}]   ;;  %s393_s2 = inlined_call_operand.hbm [shape: f32[128,128], index: 2, kind: input, shape index: {}]   ;;  %s394_s3 = inlined_call_operand.vmem [shape: f32[1,128], index: 3, kind: input, shape index: {}]   ;;  %s395_s4 = inlined_call_operand.hbm [shape: f32[8,128], index: 4, kind: output, shape index: {}]  }
   0x1   :  { %11 = vsyncpa [#allocation8], 0 }
   0x2   :  { %12 = vsyncpa [#allocation6], 0  ;;  %s312_s15 = smov [#allocation4]   ;;  %s313_s17 = smov [#allocation7]  }
   0x3   :  { %s19_s16 = sshll.u32 %s312_s15, 4  ;;  %s28_s18 = sshll.u32 %s313_s17, 4  ;;  %s20_s16 = int_to_ptr.vmem [resolvable:$true] %s19_s16  ;;  %s345_s18 = int_to_ptr.vmem [resolvable:$true] %s28_s18 }
   0x4   :  { %s240_s20 = scalar_lea.hbm %s392_s1, 128 }
   0x5   :  { %p241_p0 = scmp.ne.s32.totalorder %s392_s1, %s240_s20  ;;  %p244_p1 = scmp.lt.u32.totalorder %s240_s20, %s392_s1 }
   0x7   :  { %p246_p2 = pnand %p244_p1, %p241_p0 }
   0x9   :  { %249 = shalt.err (!%p246_p2)
}
   0xa   :  { %s250_s25 = scalar_lea.vmem %s20_s16, 128  ;;  %p255_p4 = scmp.lt.s32.totalorder %s20_s16, %s20_s16 }
   0xb   :  { %p251_p3 = scmp.ne.s32.totalorder %s20_s16, %s250_s25  ;;  %p256_p5 = scmp.lt.s32.totalorder %s250_s25, %s250_s25 }
   0xd   :  { %p257_p6 = por %p256_p5, %p255_p4 }
   0xf   :  { %p258_p7 = pnand %p257_p6, %p251_p3 }
  0x11   :  { %261 = shalt.err (!%p258_p7)
}
  0x12   :  { %22 = dma.hbm_to_vmem [thread:$0]  %s392_s1, 128, %s20_s16, [#allocation5]  }
  0x13   :  { %s262_s30 = scalar_lea.hbm %s393_s2, 2048 }
  0x14   :  { %p263_p8 = scmp.ne.s32.totalorder %s393_s2, %s262_s30  ;;  %p266_p9 = scmp.lt.u32.totalorder %s262_s30, %s393_s2 }
  0x16   :  { %p268_p10 = pnand %p266_p9, %p263_p8 }
  0x18   :  { %271 = shalt.err (!%p268_p10)
}
  0x19   :  { %s272_s9 = scalar_lea.vmem %s345_s18, 2048  ;;  %p277_p12 = scmp.lt.s32.totalorder %s345_s18, %s345_s18 }
  0x1a   :  { %p273_p11 = scmp.ne.s32.totalorder %s345_s18, %s272_s9  ;;  %p278_p13 = scmp.lt.s32.totalorder %s272_s9, %s272_s9 }
  0x1c   :  { %p279_p0 = por %p278_p13, %p277_p12 }
  0x1e   :  { %p280_p1 = pnand %p279_p0, %p273_p11 }
  0x20   :  { %283 = shalt.err (!%p280_p1)
}
  0x21   :  { %s314_s1 = smov 128   ;;  %s315_s10 = smov 8  }
  0x22   :  { %34 = dma.hbm_to_vmem [thread:$0]  %s393_s2, 2048, %s345_s18, [#allocation8], %s314_s1, %s314_s1, %s315_s10  }
  0x23   :  { %306 = dma.done.wait [#allocation5], 128  }
  0x24   :  { %307 = vsyncadd [#allocation5], 4294967168 }
  0x25   :  { %308 = dma.done.wait [#allocation8], 2048  }
  0x26   :  { %309 = vsyncadd [#allocation8], 4294965248  ;;  %v316_v0 = vmov 0.0|0.0   ;;  %vm317_vm0 = vmmov 0   ;;  %v318_v1 = vmov 0.0   ;;  %v45_v2 = vld [vmem:[#allocation7] sm:$0xff] }
  0x27   :  { %208 = vmatprep.subr.bf16.mxu0 %v316_v0  ;;  %205 = vmatprep.mubr.msk.f32.mxu0 %vm317_vm0, %v318_v1  ;;  %v46_v3 = vld [vmem:[#allocation7 + $0x8] sm:$0xff]  ;;  %v47_v4 = vld [vmem:[#allocation7 + $0x10] sm:$0xff]  ;;  %v48_v6 = vld [vmem:[#allocation7 + $0x18] sm:$0xff]  ;;  %s319_s14 = smov [#allocation9]  }
  0x28   :  { %v209_v5 = vpack.c.bf16 %v46_v3, %v45_v2  ;;  %v212_v7 = vpack.c.bf16 %v48_v6, %v47_v4  ;;  %v49_v8 = vld [vmem:[#allocation7 + $0x20] sm:$0xff]  ;;  %v50_v9 = vld [vmem:[#allocation7 + $0x28] sm:$0xff]  ;;  %v51_v11 = vld [vmem:[#allocation7 + $0x30] sm:$0xff]  ;;  %s145_s15 = sshll.u32 %s319_s14, 4  ;;  %s146_s15 = int_to_ptr.vmem [resolvable:$true] %s145_s15 }
  0x29   :  { %v215_v10 = vpack.c.bf16 %v50_v9, %v49_v8  ;;  %v52_v12 = vld [vmem:[#allocation7 + $0x38] sm:$0xff]  ;;  %v53_v14 = vld [vmem:[#allocation7 + $0x40] sm:$0xff]  ;;  %v54_v15 = vld [vmem:[#allocation7 + $0x48] sm:$0xff]  ;;  %s284_s16 = scalar_lea.vmem %s146_s15, 128  ;;  %p289_p3 = scmp.lt.s32.totalorder %s146_s15, %s146_s15 }
  0x2a   :  { %210 = vmatpush3.bf16.msra.mxu0 %v209_v5  ;;  %v218_v13 = vpack.c.bf16 %v52_v12, %v51_v11  ;;  %v221_v16 = vpack.c.bf16 %v54_v15, %v53_v14  ;;  %v55_v17 = vld [vmem:[#allocation7 + $0x50] sm:$0xff]  ;;  %v56_v18 = vld [vmem:[#allocation7 + $0x58] sm:$0xff]  ;;  %v57_v20 = vld [vmem:[#allocation7 + $0x60] sm:$0xff]  ;;  %p285_p2 = scmp.ne.s32.totalorder %s146_s15, %s284_s16  ;;  %p290_p4 = scmp.lt.s32.totalorder %s284_s16, %s284_s16 }
  0x2b   :  { %211 = vmatprep.subr.bf16.mxu0 %v316_v0  ;;  %v224_v19 = vpack.c.bf16 %v56_v18, %v55_v17  ;;  %v58_v21 = vld [vmem:[#allocation7 + $0x68] sm:$0xff]  ;;  %v59_v23 = vld [vmem:[#allocation7 + $0x70] sm:$0xff]  ;;  %v60_v24 = vld [vmem:[#allocation7 + $0x78] sm:$0xff] }
  0x2c   :  { %v227_v22 = vpack.c.bf16 %v58_v21, %v57_v20  ;;  %v230_v25 = vpack.c.bf16 %v60_v24, %v59_v23  ;;  %v43_v26 = vld [vmem:[#allocation4] sm:$0xff]  ;;  %p291_p5 = por %p290_p4, %p289_p3 }
  0x2d   :  { %v44_v27 = vmax.f32 %v43_v26, 0.0  ;;  %v155_v28 = vld [vmem:[%s394_s3] ss:$0 sm:$0xff] }
  0x2e   :  { %213 = vmatpush3.bf16.msra.mxu0 %v212_v7  ;;  %p292_p6 = pnand %p291_p5, %p285_p2 }
  0x2f   :  { %214 = vmatprep.subr.bf16.mxu0 %v316_v0 }
  0x32   :  { %216 = vmatpush3.bf16.msra.mxu0 %v215_v10 }
  0x33   :  { %217 = vmatprep.subr.bf16.mxu0 %v316_v0 }
  0x36   :  { %219 = vmatpush3.bf16.msra.mxu0 %v218_v13 }
  0x37   :  { %220 = vmatprep.subr.bf16.mxu0 %v316_v0 }
  0x3a   :  { %222 = vmatpush3.bf16.msra.mxu0 %v221_v16 }
  0x3b   :  { %223 = vmatprep.subr.bf16.mxu0 %v316_v0 }
  0x3e   :  { %225 = vmatpush3.bf16.msra.mxu0 %v224_v19 }
  0x3f   :  { %226 = vmatprep.subr.bf16.mxu0 %v316_v0 }
  0x42   :  { %228 = vmatpush3.bf16.msra.mxu0 %v227_v22 }
  0x43   :  { %229 = vmatprep.subr.bf16.mxu0 %v316_v0 }
  0x46   :  { %231 = vmatpush3.bf16.msra.mxu0 %v230_v25 }
  0x49   :  { %206 = vmatmul.mubr.f32.vlgmr.msra.gmra.mrb[0].mxu0 %v44_v27 }
 0x11c   :  { %v134_v29 = vpop.f32.mrb[0].mxu0 }
 0x11d   :  { %v135_v30 = vadd.f32 %v155_v28, %v134_v29  ;;  %v207_v31 = vpop.f32.mrb[1].mxu0 }
 0x11f   :  { %138 = vst [vmem:[#allocation9] sm:$0xff] %v135_v30 }
 0x120   :  { %295 = shalt.err (!%p292_p6)
}
 0x121   :  { %s296_s0 = scalar_lea.hbm %s395_s4, 128 }
 0x122   :  { %p297_p7 = scmp.ne.s32.totalorder %s395_s4, %s296_s0  ;;  %p300_p8 = scmp.lt.u32.totalorder %s296_s0, %s395_s4 }
 0x124   :  { %p302_p9 = pnand %p300_p8, %p297_p7 }
 0x126   :  { %305 = shalt.err (!%p302_p9)
}
 0x127   :  { %148 = dma.vmem_to_hbm [thread:$0]  %s146_s15, 128, %s395_s4, [#allocation6]  }
 0x128   :  { %310 = dma.done.wait [#allocation6], 128  }
 0x129   :  { %311 = vsyncadd [#allocation6], 4294967168 }
 0x12a   :  { %152 = vsyncpa [#allocation5], 1 }
 0x12b   :  { %153 = vsyncpa [#allocation8], 1 }
 0x12c   :  { %154 = vsyncpa [#allocation6], 1 }

</bundles_post_ra>
